<compile_context>
chip_gen: v7x
topology: tpu7x:2x2x1
jax: 0.10.0
libtpu: 0.0.40
codegen_flags: <defaults>
</compile_context>

<pallas_src>
import functools

import jax
import jax.numpy as jnp
from jax import lax
from jax.experimental import pallas as pl
from jax.experimental.pallas import tpu as pltpu


def _round_up(x: int, m: int) -> int:
    return ((x + m - 1) // m) * m


def _vmem_budget() -> tuple[int, int]:
    """Returns (resident_budget_bytes, vmem_limit_bytes), generation-aware."""
    try:
        phys = int(pltpu.get_tpu_info().vmem_capacity_bytes)
    except Exception:
        phys = 64 * 2**20  # conservative: v7x per-TC VMEM
    # v7x (64 MiB/TC): ~24 MiB resident; v5e/v6e (128 MiB): ~28 MiB resident.
    budget = min((phys * 3) // 8, 28 * 2**20)
    vmem_limit = min(phys // 2, budget + 8 * 2**20)
    return budget, vmem_limit


# ---------------------------------------------------------------------------
# Full-batch-in-block path (one fused pass, two-pass centered variance)
# ---------------------------------------------------------------------------
def _cnorm_fullbatch_kernel(x_ref, p_ref, o_ref, *, eps: float, inv_b: float):
    xr = x_ref[0]                                   # (B, TILE_F) f32
    xi = x_ref[1]
    mean_r = jnp.sum(xr, axis=0, keepdims=True) * inv_b
    mean_i = jnp.sum(xi, axis=0, keepdims=True) * inv_b
    dr = xr - mean_r
    di = xi - mean_i
    var = jnp.sum(dr * dr + di * di, axis=0, keepdims=True) * inv_b
    inv = lax.rsqrt(var + eps)                      # (1, TILE_F)

    # Packed params: rows = [w_r, w_i, b_r, b_i].
    wr = p_ref[0:1, :]
    wi = p_ref[1:2, :]
    br = p_ref[2:3, :]
    bi = p_ref[3:4, :]

    # out = w * (x - mean) * inv + b   (complex, inv real)
    o_ref[0] = (wr * dr - wi * di) * inv + br
    o_ref[1] = (wr * di + wi * dr) * inv + bi


# ---------------------------------------------------------------------------
# Large-B fallback: pass 1 accumulates per-feature stats over batch tiles.
# ---------------------------------------------------------------------------
def _cnorm_stats_kernel(x_ref, s_ref, *, batch: int, tile_b: int):
    b = pl.program_id(1)

    @pl.when(b == 0)
    def _():
        s_ref[...] = jnp.zeros_like(s_ref)

    # Mask rows beyond the true batch size in the last (partial) batch tile.
    rows_left = batch - b * tile_b
    row = lax.broadcasted_iota(jnp.int32, x_ref.shape[1:], 0)
    valid = row < rows_left
    xr = jnp.where(valid, x_ref[0], 0.0)
    xi = jnp.where(valid, x_ref[1], 0.0)

    s_ref[...] += jnp.concatenate(
        [jnp.sum(xr, axis=0, keepdims=True),
         jnp.sum(xi, axis=0, keepdims=True),
         jnp.sum(xr * xr + xi * xi, axis=0, keepdims=True)], axis=0)


# Large-B fallback: pass 2 normalizes using the accumulated stats.
def _cnorm_apply_kernel(x_ref, s_ref, p_ref, o_ref, *, eps: float, inv_b: float):
    mean_r = s_ref[0:1, :] * inv_b
    mean_i = s_ref[1:2, :] * inv_b
    # TODO(synk): one-pass E[|x|^2]-|mean|^2 variance has mild cancellation
    # risk when |mean| >> std; a Welford/second centered pass over batch tiles
    # would be needed for fully robust large-B statistics.
    var = jnp.maximum(
        s_ref[2:3, :] * inv_b - (mean_r * mean_r + mean_i * mean_i), 0.0)
    inv = lax.rsqrt(var + eps)

    wr = p_ref[0:1, :]
    wi = p_ref[1:2, :]
    br = p_ref[2:3, :]
    bi = p_ref[3:4, :]

    dr = x_ref[0] - mean_r
    di = x_ref[1] - mean_i
    o_ref[0] = (wr * dr - wi * di) * inv + br
    o_ref[1] = (wr * di + wi * dr) * inv + bi


# ---------------------------------------------------------------------------
# Wrapper
# ---------------------------------------------------------------------------
def complex_norm(x: jax.Array, weight: jax.Array, bias: jax.Array,
                 eps: float = 1e-5, *, vmem_budget_bytes: int | None = None
                 ) -> jax.Array:
    """x: (B, F) complex64; weight/bias: (F,) complex64 -> (B, F) complex64."""
    B, F = x.shape
    budget, vmem_limit = _vmem_budget()
    if vmem_budget_bytes is not None:
        budget = int(vmem_budget_bytes)

    # Planar packed layout (2, B, F): plane 0 = real, plane 1 = imag.
    x_packed = jnp.stack([jnp.real(x), jnp.imag(x)]).astype(jnp.float32)
    params = jnp.stack([jnp.real(weight), jnp.imag(weight),
                        jnp.real(bias), jnp.imag(bias)]).astype(jnp.float32)

    inv_b = 1.0 / float(B)
    f_lanes = _round_up(max(F, 1), 128)

    # Resident estimate: (2 in + 2 out planes) * double-buffer * B * tile_f * 4B
    # = 32 * B * tile_f bytes (params are negligible).
    if 32 * B * 128 <= budget:
        # ---- full batch resident per feature tile: single fused pass ----
        tile_f = min(f_lanes, max(128, (budget // (32 * B)) // 128 * 128))
        if f_lanes >= 256:
            # Keep >= 2 feature tiles so megacore (v7x) can shard the axis.
            tile_f = min(tile_f, _round_up(pl.cdiv(F, 2), 128))

        x_spec = pl.BlockSpec((2, B, tile_f), lambda j: (0, 0, j))
        p_spec = pl.BlockSpec((4, tile_f), lambda j: (0, j))

        out = pl.pallas_call(
            functools.partial(_cnorm_fullbatch_kernel,
                              eps=float(eps), inv_b=inv_b),
            out_shape=jax.ShapeDtypeStruct((2, B, F), jnp.float32),
            grid=(pl.cdiv(F, tile_f),),
            in_specs=[x_spec, p_spec],
            out_specs=x_spec,
            compiler_params=pltpu.CompilerParams(
                dimension_semantics=("parallel",),
                vmem_limit_bytes=vmem_limit),
        )(x_packed, params)
    else:
        # ---- large-B fallback: stats accumulation pass + normalize pass ----
        tile_f = min(512, f_lanes)
        tile_b = max(8, min(_round_up(B, 8),
                            (budget // (32 * tile_f)) // 8 * 8))
        num_f = pl.cdiv(F, tile_f)
        num_b = pl.cdiv(B, tile_b)

        x_spec = pl.BlockSpec((2, tile_b, tile_f), lambda j, b: (0, b, j))
        s_spec = pl.BlockSpec((3, tile_f), lambda j, b: (0, j))
        p_spec = pl.BlockSpec((4, tile_f), lambda j, b: (0, j))

        stats = pl.pallas_call(
            functools.partial(_cnorm_stats_kernel, batch=B, tile_b=tile_b),
            out_shape=jax.ShapeDtypeStruct((3, F), jnp.float32),
            grid=(num_f, num_b),
            in_specs=[x_spec],
            out_specs=s_spec,
            compiler_params=pltpu.CompilerParams(
                dimension_semantics=("parallel", "arbitrary"),
                vmem_limit_bytes=vmem_limit),
        )(x_packed)

        out = pl.pallas_call(
            functools.partial(_cnorm_apply_kernel,
                              eps=float(eps), inv_b=inv_b),
            out_shape=jax.ShapeDtypeStruct((2, B, F), jnp.float32),
            grid=(num_f, num_b),
            in_specs=[x_spec, s_spec, p_spec],
            out_specs=x_spec,
            compiler_params=pltpu.CompilerParams(
                dimension_semantics=("parallel", "parallel"),
                vmem_limit_bytes=vmem_limit),
        )(x_packed, stats, params)

    return lax.complex(out[0], out[1]).astype(jnp.complex64)


def _reference(x, weight, bias, eps=1e-5):
    mean = jnp.mean(x, axis=0, keepdims=True)
    var = jnp.mean(jnp.abs(x - mean) ** 2, axis=0, keepdims=True)
    x_norm = (x - mean) / jnp.sqrt(var + eps)
    return weight[None, :] * x_norm + bias[None, :]


if __name__ == "__main__":
    key = jax.random.PRNGKey(0)
    kr, ki, kw, kb = jax.random.split(key, 4)

    # --- Test 1: small shapes, full-batch-in-block path -------------------
    batch, num_features = 8, 32
    x = lax.complex(
        jax.random.normal(kr, (batch, num_features), dtype=jnp.float32),
        jax.random.normal(ki, (batch, num_features), dtype=jnp.float32),
    ).astype(jnp.complex64)
    weight = (jnp.ones((num_features,), dtype=jnp.complex64)
              + 0.1 * lax.complex(
                  jax.random.normal(kw, (num_features,), dtype=jnp.float32),
                  jax.random.normal(kb, (num_features,), dtype=jnp.float32)
              ).astype(jnp.complex64))
    bias = 0.05 * lax.complex(
        jax.random.normal(kb, (num_features,), dtype=jnp.float32),
        jax.random.normal(kw, (num_features,), dtype=jnp.float32)
    ).astype(jnp.complex64)

    out = jax.block_until_ready(complex_norm(x, weight, bias, eps=1e-5))
    ref = _reference(x, weight, bias, eps=1e-5)
    assert out.shape == (batch, num_features) and out.dtype == jnp.complex64
    assert jnp.allclose(out, ref, atol=1e-4, rtol=1e-4), (
        float(jnp.max(jnp.abs(out - ref))))

    # --- Test 2: large-B two-pass path (forced via tiny budget) -----------
    # B=60 / F=160 exercise partial batch tiles (masking) and a partial
    # (lane-masked) feature tile.
    k2 = jax.random.fold_in(key, 1)
    kr2, ki2, kw2, kb2 = jax.random.split(k2, 4)
    B2, F2 = 60, 160
    x2 = lax.complex(
        jax.random.normal(kr2, (B2, F2), dtype=jnp.float32),
        jax.random.normal(ki2, (B2, F2), dtype=jnp.float32),
    ).astype(jnp.complex64)
    w2 = lax.complex(
        jax.random.normal(kw2, (F2,), dtype=jnp.float32),
        jax.random.normal(kb2, (F2,), dtype=jnp.float32),
    ).astype(jnp.complex64)
    b2 = lax.complex(
        jax.random.normal(kb2, (F2,), dtype=jnp.float32),
        jax.random.normal(kw2, (F2,), dtype=jnp.float32),
    ).astype(jnp.complex64)

    out2 = jax.block_until_ready(
        complex_norm(x2, w2, b2, eps=1e-5, vmem_budget_bytes=128 * 1024))
    ref2 = _reference(x2, w2, b2, eps=1e-5)
    assert out2.shape == (B2, F2) and out2.dtype == jnp.complex64
    assert jnp.allclose(out2, ref2, atol=1e-4, rtol=1e-4), (
        float(jnp.max(jnp.abs(out2 - ref2))))

    print("KERNEL_OK")
</pallas_src>

<mosaic_0001>
module attributes {stable_mosaic.version = 11 : i64} {
  func.func @_cnorm_fullbatch_kernel(%arg0: i32, %arg1: memref<2x8x128xf32, #tpu.memory_space<vmem>>, %arg2: memref<4x128xf32, #tpu.memory_space<vmem>>, %arg3: memref<2x8x128xf32, #tpu.memory_space<vmem>>) attributes {dimension_semantics = [#tpu.dimension_semantics<parallel>], iteration_bounds = array<i64: 1>, scalar_prefetch = 0 : i64, scratch_operands = 0 : i64, tpu.core_type = #tpu.core_type<tc>, window_params = [{transform_indices = @transform_0, window_bounds = array<i64: 2, 8, 128>}, {transform_indices = @transform_1, window_bounds = array<i64: 4, 128>}, {transform_indices = @transform_2, window_bounds = array<i64: 2, 8, 128>}]} {
    %c0 = arith.constant 0 : index
    %c0_0 = arith.constant 0 : index
    %c0_1 = arith.constant 0 : index
    %0 = vector.load %arg1[%c0, %c0_0, %c0_1] : memref<2x8x128xf32, #tpu.memory_space<vmem>>, vector<1x8x128xf32>
    %1 = vector.shape_cast %0 : vector<1x8x128xf32> to vector<8x128xf32>
    %c1 = arith.constant 1 : index
    %c0_2 = arith.constant 0 : index
    %c0_3 = arith.constant 0 : index
    %2 = vector.load %arg1[%c1, %c0_2, %c0_3] : memref<2x8x128xf32, #tpu.memory_space<vmem>>, vector<1x8x128xf32>
    %3 = vector.shape_cast %2 : vector<1x8x128xf32> to vector<8x128xf32>
    %cst = arith.constant dense<0.000000e+00> : vector<128xf32>
    %4 = vector.multi_reduction <add>, %1, %cst [0] : vector<8x128xf32> to vector<128xf32>
    %5 = vector.shape_cast %4 : vector<128xf32> to vector<1x128xf32>
    %cst_4 = arith.constant 1.250000e-01 : f32
    %6 = vector.broadcast %cst_4 : f32 to vector<1x128xf32>
    %7 = arith.mulf %5, %6 : vector<1x128xf32>
    %cst_5 = arith.constant dense<0.000000e+00> : vector<128xf32>
    %8 = vector.multi_reduction <add>, %3, %cst_5 [0] : vector<8x128xf32> to vector<128xf32>
    %9 = vector.shape_cast %8 : vector<128xf32> to vector<1x128xf32>
    %cst_6 = arith.constant 1.250000e-01 : f32
    %10 = vector.broadcast %cst_6 : f32 to vector<1x128xf32>
    %11 = arith.mulf %9, %10 : vector<1x128xf32>
    %12 = vector.broadcast %7 : vector<1x128xf32> to vector<8x128xf32>
    %13 = arith.subf %1, %12 : vector<8x128xf32>
    %14 = vector.broadcast %11 : vector<1x128xf32> to vector<8x128xf32>
    %15 = arith.subf %3, %14 : vector<8x128xf32>
    %16 = arith.mulf %13, %13 : vector<8x128xf32>
    %17 = arith.mulf %15, %15 : vector<8x128xf32>
    %18 = arith.addf %16, %17 : vector<8x128xf32>
    %cst_7 = arith.constant dense<0.000000e+00> : vector<128xf32>
    %19 = vector.multi_reduction <add>, %18, %cst_7 [0] : vector<8x128xf32> to vector<128xf32>
    %20 = vector.shape_cast %19 : vector<128xf32> to vector<1x128xf32>
    %cst_8 = arith.constant 1.250000e-01 : f32
    %21 = vector.broadcast %cst_8 : f32 to vector<1x128xf32>
    %22 = arith.mulf %20, %21 : vector<1x128xf32>
    %cst_9 = arith.constant 9.99999974E-6 : f32
    %23 = vector.broadcast %cst_9 : f32 to vector<1x128xf32>
    %24 = arith.addf %22, %23 : vector<1x128xf32>
    %25 = math.rsqrt %24 : vector<1x128xf32>
    %c0_10 = arith.constant 0 : index
    %c0_11 = arith.constant 0 : index
    %26 = vector.load %arg2[%c0_10, %c0_11] : memref<4x128xf32, #tpu.memory_space<vmem>>, vector<1x128xf32>
    %c1_12 = arith.constant 1 : index
    %c0_13 = arith.constant 0 : index
    %27 = vector.load %arg2[%c1_12, %c0_13] : memref<4x128xf32, #tpu.memory_space<vmem>>, vector<1x128xf32>
    %c2 = arith.constant 2 : index
    %c0_14 = arith.constant 0 : index
    %28 = vector.load %arg2[%c2, %c0_14] : memref<4x128xf32, #tpu.memory_space<vmem>>, vector<1x128xf32>
    %c3 = arith.constant 3 : index
    %c0_15 = arith.constant 0 : index
    %29 = vector.load %arg2[%c3, %c0_15] : memref<4x128xf32, #tpu.memory_space<vmem>>, vector<1x128xf32>
    %30 = vector.broadcast %26 : vector<1x128xf32> to vector<8x128xf32>
    %31 = arith.mulf %30, %13 : vector<8x128xf32>
    %32 = vector.broadcast %27 : vector<1x128xf32> to vector<8x128xf32>
    %33 = arith.mulf %32, %15 : vector<8x128xf32>
    %34 = arith.subf %31, %33 : vector<8x128xf32>
    %35 = vector.broadcast %25 : vector<1x128xf32> to vector<8x128xf32>
    %36 = arith.mulf %34, %35 : vector<8x128xf32>
    %37 = vector.broadcast %28 : vector<1x128xf32> to vector<8x128xf32>
    %38 = arith.addf %36, %37 : vector<8x128xf32>
    %c0_16 = arith.constant 0 : index
    %c0_17 = arith.constant 0 : index
    %c0_18 = arith.constant 0 : index
    %39 = vector.load %arg3[%c0_16, %c0_17, %c0_18] : memref<2x8x128xf32, #tpu.memory_space<vmem>>, vector<1x8x128xf32>
    %40 = vector.shape_cast %39 : vector<1x8x128xf32> to vector<8x128xf32>
    %41 = vector.shape_cast %38 : vector<8x128xf32> to vector<1x8x128xf32>
    tpu.vector_store %arg3[%c0_16, %c0_17, %c0_18], %41 {strides = array<i32>} : memref<2x8x128xf32, #tpu.memory_space<vmem>>, vector<1x8x128xf32>,
    %42 = vector.broadcast %26 : vector<1x128xf32> to vector<8x128xf32>
    %43 = arith.mulf %42, %15 : vector<8x128xf32>
    %44 = vector.broadcast %27 : vector<1x128xf32> to vector<8x128xf32>
    %45 = arith.mulf %44, %13 : vector<8x128xf32>
    %46 = arith.addf %43, %45 : vector<8x128xf32>
    %47 = vector.broadcast %25 : vector<1x128xf32> to vector<8x128xf32>
    %48 = arith.mulf %46, %47 : vector<8x128xf32>
    %49 = vector.broadcast %29 : vector<1x128xf32> to vector<8x128xf32>
    %50 = arith.addf %48, %49 : vector<8x128xf32>
    %c1_19 = arith.constant 1 : index
    %c0_20 = arith.constant 0 : index
    %c0_21 = arith.constant 0 : index
    %51 = vector.load %arg3[%c1_19, %c0_20, %c0_21] : memref<2x8x128xf32, #tpu.memory_space<vmem>>, vector<1x8x128xf32>
    %52 = vector.shape_cast %51 : vector<1x8x128xf32> to vector<8x128xf32>
    %53 = vector.shape_cast %50 : vector<8x128xf32> to vector<1x8x128xf32>
    tpu.vector_store %arg3[%c1_19, %c0_20, %c0_21], %53 {strides = array<i32>} : memref<2x8x128xf32, #tpu.memory_space<vmem>>, vector<1x8x128xf32>,
    return
  }
  func.func @transform_0(%arg0: i32) -> (i32, i32, i32) {
    %c0_i32 = arith.constant 0 : i32
    %c0_i32_0 = arith.constant 0 : i32
    %c0_i32_1 = arith.constant 0 : i32
    return %c0_i32, %c0_i32_0, %arg0 : i32, i32, i32
  }
  func.func @transform_1(%arg0: i32) -> (i32, i32) {
    %c0_i32 = arith.constant 0 : i32
    %c0_i32_0 = arith.constant 0 : i32
    return %c0_i32, %arg0 : i32, i32
  }
  func.func @transform_2(%arg0: i32) -> (i32, i32, i32) {
    %c0_i32 = arith.constant 0 : i32
    %c0_i32_0 = arith.constant 0 : i32
    %c0_i32_1 = arith.constant 0 : i32
    return %c0_i32, %c0_i32_0, %arg0 : i32, i32, i32
  }
}

</mosaic_0001>

<bundles_post_ra>
// kernel: tpu_custom_call.1
= control target key start
LH: loop header
LB: loop body
LE: loop exit
PB: predicated region body
PF: predicated region fallthrough
CT: control target
= control target key end

     0   :  { %7 = vsyncpa [#allocation3], 0  ;;  %s265_s0 = inlined_call_operand.hbm [shape: f32[2,8,32], index: 0, kind: input, shape index: {}]   ;;  %s266_s1 = inlined_call_operand.hbm [shape: f32[4,32], index: 1, kind: input, shape index: {}]   ;;  %s267_s2 = inlined_call_operand.hbm [shape: f32[2,8,32], index: 2, kind: output, shape index: {}]  }
   0x1   :  { %8 = vsyncpa [#allocation6], 0 }
   0x2   :  { %9 = vsyncpa [#allocation4], 0  ;;  %s203_s9 = smov [#allocation2]   ;;  %s131_s13 = scalar_lea.hbm %s265_s0, 256 }
   0x3   :  { %s15_s10 = sshll.u32 %s203_s9, 4  ;;  %p132_p0 = scmp.ne.s32.totalorder %s265_s0, %s131_s13  ;;  %s16_s10 = int_to_ptr.vmem [resolvable:$true] %s15_s10 }
   0x4   :  { %p135_p1 = scmp.lt.u32.totalorder %s131_s13, %s265_s0 }
   0x6   :  { %p137_p2 = pnand %p135_p1, %p132_p0 }
   0x8   :  { %140 = shalt.err (!%p137_p2)
}
   0x9   :  { %s141_s18 = scalar_lea.vmem %s16_s10, 256  ;;  %p146_p4 = scmp.lt.s32.totalorder %s16_s10, %s16_s10 }
   0xa   :  { %p142_p3 = scmp.ne.s32.totalorder %s16_s10, %s141_s18  ;;  %p147_p5 = scmp.lt.s32.totalorder %s141_s18, %s141_s18 }
   0xc   :  { %p148_p6 = por %p147_p5, %p146_p4 }
   0xe   :  { %p149_p7 = pnand %p148_p6, %p142_p3 }
  0x10   :  { %152 = shalt.err (!%p149_p7)
}
  0x11   :  { %s204_s19 = smov 128   ;;  %s205_s20 = smov 8  }
  0x12   :  { %21 = dma.hbm_to_vmem [thread:$0]  %s265_s0, 256, %s16_s10, [#allocation3], %s204_s19, %s204_s19, %s205_s20  }
  0x13   :  { %s206_s23 = smov [#allocation5]   ;;  %s153_s27 = scalar_lea.hbm %s266_s1, 64 }
  0x14   :  { %s28_s24 = sshll.u32 %s206_s23, 4  ;;  %p154_p8 = scmp.ne.s32.totalorder %s266_s1, %s153_s27  ;;  %s29_s24 = int_to_ptr.vmem [resolvable:$true] %s28_s24 }
  0x15   :  { %p157_p9 = scmp.lt.u32.totalorder %s153_s27, %s266_s1 }
  0x17   :  { %p159_p10 = pnand %p157_p9, %p154_p8 }
  0x19   :  { %162 = shalt.err (!%p159_p10)
}
  0x1a   :  { %s163_s4 = scalar_lea.vmem %s29_s24, 64  ;;  %p168_p12 = scmp.lt.s32.totalorder %s29_s24, %s29_s24 }
  0x1b   :  { %p164_p11 = scmp.ne.s32.totalorder %s29_s24, %s163_s4  ;;  %p169_p13 = scmp.lt.s32.totalorder %s163_s4, %s163_s4 }
  0x1d   :  { %p170_p0 = por %p169_p13, %p168_p12 }
  0x1f   :  { %p171_p1 = pnand %p170_p0, %p164_p11 }
  0x21   :  { %174 = shalt.err (!%p171_p1)
}
  0x22   :  { %31 = dma.hbm_to_vmem [thread:$0]  %s266_s1, 64, %s29_s24, [#allocation6]  }
  0x23   :  { %197 = dma.done.wait [#allocation3], 256  }
  0x24   :  { %198 = vsyncadd [#allocation3], 4294967040 }
  0x25   :  { %199 = dma.done.wait [#allocation6], 64  }
  0x26   :  { %200 = vsyncadd [#allocation6], 4294967232  ;;  %v38_v0 = vld [vmem:[#allocation2] sm:$0xff]  ;;  %v40_v1 = vld [vmem:[#allocation2 + $0x8] sm:$0xff]  ;;  %s207_s1 = smov [#allocation7]  }
  0x27   :  { %v41_v2 = vrot.slane %v38_v0, 4  ;;  %v48_v3 = vrot.slane %v40_v1, 4  ;;  %v120_v29 = vld [vmem:[#allocation5] ss:$0 sm:$0xff]  ;;  %v121_v30 = vld [vmem:[#allocation5 + $0x1] ss:$0 sm:$0xff] }
  0x28   :  { %v122_v38 = vld [vmem:[#allocation5 + $0x2] ss:$0 sm:$0xff]  ;;  %v123_v39 = vld [vmem:[#allocation5 + $0x3] ss:$0 sm:$0xff]  ;;  %s107_s6 = sshll.u32 %s207_s1, 4  ;;  %s108_s6 = int_to_ptr.vmem [resolvable:$true] %s107_s6 }
  0x29   :  { %v42_v4 = vadd.f32 %v41_v2, %v38_v0  ;;  %v49_v5 = vadd.f32 %v48_v3, %v40_v1  ;;  %s175_s7 = scalar_lea.vmem %s108_s6, 256  ;;  %p180_p3 = scmp.lt.s32.totalorder %s108_s6, %s108_s6 }
  0x2a   :  { %p176_p2 = scmp.ne.s32.totalorder %s108_s6, %s175_s7  ;;  %p181_p4 = scmp.lt.s32.totalorder %s175_s7, %s175_s7 }
  0x2b   :  { %v43_v6 = vrot.slane %v42_v4, 2  ;;  %v50_v7 = vrot.slane %v49_v5, 2 }
  0x2c   :  { %p182_p5 = por %p181_p4, %p180_p3 }
  0x2d   :  { %v44_v8 = vadd.f32 %v43_v6, %v42_v4  ;;  %v51_v9 = vadd.f32 %v50_v7, %v49_v5 }
  0x2e   :  { %p183_p6 = pnand %p182_p5, %p176_p2 }
  0x2f   :  { %v45_v10 = vrot.slane %v44_v8, 1  ;;  %v52_v11 = vrot.slane %v51_v9, 1 }
  0x31   :  { %v46_v12 = vadd.f32 %v45_v10, %v44_v8  ;;  %v53_v13 = vadd.f32 %v52_v11, %v51_v9 }
  0x33   :  { %v47_v14 = vmul.f32 0.125, %v46_v12  ;;  %v54_v15 = vmul.f32 0.125, %v53_v13 }
  0x35   :  { %v55_v16 = vsub.f32 %v38_v0, %v47_v14  ;;  %v56_v17 = vsub.f32 %v40_v1, %v54_v15 }
  0x37   :  { %v57_v18 = vmul.f32 %v55_v16, %v55_v16  ;;  %v58_v19 = vmul.f32 %v56_v17, %v56_v17  ;;  %v77_v31 = vmul.f32 %v120_v29, %v55_v16  ;;  %v82_v32 = vmul.f32 %v121_v30, %v56_v17 }
  0x38   :  { %v91_v33 = vmul.f32 %v120_v29, %v56_v17  ;;  %v92_v34 = vmul.f32 %v121_v30, %v55_v16 }
  0x39   :  { %v59_v20 = vadd.f32 %v58_v19, %v57_v18  ;;  %v83_v35 = vsub.f32 %v77_v31, %v82_v32 }
  0x3a   :  { %v93_v36 = vadd.f32 %v92_v34, %v91_v33 }
  0x3b   :  { %v60_v21 = vrot.slane %v59_v20, 4 }
  0x3d   :  { %v61_v22 = vadd.f32 %v60_v21, %v59_v20 }
  0x3f   :  { %v62_v23 = vrot.slane %v61_v22, 2 }
  0x41   :  { %v63_v24 = vadd.f32 %v62_v23, %v61_v22 }
  0x43   :  { %v64_v25 = vrot.slane %v63_v24, 1 }
  0x45   :  { %v65_v26 = vadd.f32 %v64_v25, %v63_v24 }
  0x47   :  { %v66_v27 = vmul.f32 0.125, %v65_v26 }
  0x49   :  { %v67_v28 = vadd.f32 1e-05, %v66_v27 }
  0x4b   :  { %129 = vrsqrt.f32 %v67_v28 }
  0x55   :  { %v130_v37 = vpop.eup %129 }
  0x56   :  { %v84_v40 = vmul.f32 %v130_v37, %v83_v35  ;;  %v94_v41 = vmul.f32 %v130_v37, %v93_v36 }
  0x58   :  { %v89_v42 = vadd.f32 %v122_v38, %v84_v40  ;;  %v99_v43 = vadd.f32 %v123_v39, %v94_v41 }
  0x5a   :  { %90 = vst [vmem:[#allocation7] sm:$0xff] %v89_v42  ;;  %101 = vst [vmem:[#allocation7 + $0x8] sm:$0xff] %v99_v43 }
  0x5b   :  { %186 = shalt.err (!%p183_p6)
}
  0x5c   :  { %s187_s10 = scalar_lea.hbm %s267_s2, 256 }
  0x5d   :  { %p188_p7 = scmp.ne.s32.totalorder %s267_s2, %s187_s10  ;;  %p191_p8 = scmp.lt.u32.totalorder %s187_s10, %s267_s2 }
  0x5f   :  { %p193_p9 = pnand %p191_p8, %p188_p7 }
  0x61   :  { %196 = shalt.err (!%p193_p9)
}
  0x62   :  { %113 = dma.vmem_to_hbm [thread:$0]  %s108_s6, 256, %s267_s2, [#allocation4], %s204_s19, %s204_s19, %s205_s20  }
  0x63   :  { %201 = dma.done.wait [#allocation4], 256  }
  0x64   :  { %202 = vsyncadd [#allocation4], 4294967040 }
  0x65   :  { %117 = vsyncpa [#allocation3], 1 }
  0x66   :  { %118 = vsyncpa [#allocation6], 1 }
  0x67   :  { %119 = vsyncpa [#allocation4], 1 }

</bundles_post_ra>
